<compile_context>
chip_gen: v6e
topology: v6e:2x2x1
jax: 0.10.0
libtpu: 0.0.40
codegen_flags: <defaults>
</compile_context>

<pallas_src>
import jax
import jax.numpy as jnp
from jax.experimental import pallas as pl
from jax.experimental.pallas import tpu as pltpu


def _round_up(n, m):
    return ((n + m - 1) // m) * m


# ----------------------------- Pallas kernel --------------------------------
def make_model_kernel(B, A_pad):
    """Build the kernel with static batch / padded-afs sizes baked in."""
    # Static row offsets into the packed (rows, 128) parameter slab.
    OFF_CONV_W = 0                    # 16 rows,  cols 0:128 (position-expanded)
    OFF_CONV_B = 16                   # 1 row,    cols 0:128 (bias tiled x4)
    OFF_DWC = 24                      # 128 rows, cols 0:64  (rows 32:128 zero)
    OFF_DW_AFS = 24 + 128             # A_pad rows, cols 0:64 (zero pad rows)
    OFF_DB = 152 + A_pad              # 1 row,    cols 0:64
    OFF_OW = 160 + A_pad              # 1 row,    cols 0:64 (output weight row)
    OFF_OB = 168 + A_pad              # 1 row,    col 0

    def kernel(act_ref, params_ref, out_ref):
        # Static, sublane-aligned views into the parameter slab (zero cost).
        conv_w = params_ref[OFF_CONV_W:OFF_CONV_W + 16, :]          # (16, 128)
        conv_b = params_ref[OFF_CONV_B:OFF_CONV_B + 1, :]           # (1, 128)
        dwc = params_ref[OFF_DWC:OFF_DWC + 128, 0:64]               # (128, 64)
        dw_afs = params_ref[OFF_DW_AFS:OFF_DW_AFS + A_pad, 0:64]    # (A_pad, 64)
        db = params_ref[OFF_DB:OFF_DB + 1, 0:64]                    # (1, 64)
        ow_row = params_ref[OFF_OW:OFF_OW + 1, 0:64]                # (1, 64)
        ob = params_ref[OFF_OB:OFF_OB + 1, 0:1]                     # (1, 1)

        # Activation slab: rows 0:B = flattened x, rows B:2B = afs features.
        x_flat = act_ref[0:B, 0:16]                                 # (B, 16)
        afs = act_ref[B:2 * B, 0:A_pad]                             # (B, A_pad)

        # Conv2d(1,32,3x3) on a 4x4 input == ONE lane-dense MXU matmul with
        # the position-expanded weight: lanes p*32:(p+1)*32 = conv position p.
        conv = jnp.dot(x_flat, conv_w,
                       preferred_element_type=jnp.float32) + conv_b  # (B, 128)

        # MaxPool2d(2,2) over the 2x2 map == max over the 4 position blocks.
        # Two XLU lane-rolls + maxes leave the pooled 32 channels in lanes
        # 0:32 (other lanes hold partial maxes that hit zero weight rows).
        m = jnp.maximum(conv, pltpu.roll(conv, shift=64, axis=1))
        m = jnp.maximum(m, pltpu.roll(m, shift=32, axis=1))          # (B, 128)

        # Dense layer on [pooled | afs] as a split matmul (no in-kernel concat,
        # no slicing of the pooled value: dwc rows 32:128 are zero).
        hidden = (jnp.dot(m, dwc, preferred_element_type=jnp.float32)
                  + jnp.dot(afs, dw_afs, preferred_element_type=jnp.float32)
                  + db)                                              # (B, 64)

        # Output layer (64 -> 1) as a lane reduction + sigmoid.
        logits = jnp.sum(hidden * ow_row, axis=-1, keepdims=True) + ob  # (B, 1)
        out_ref[...] = jax.nn.sigmoid(logits)

    return kernel


# ----------------------------- Param packing ---------------------------------
def pack_params(params, A):
    """Pack all parameters into a single (176 + A_pad, 128) f32 slab. Done once."""
    A_pad = _round_up(A, 8)
    rows = 176 + A_pad
    conv_w = params["conv_w"]                       # (9, 32), row = kh*3 + kw

    # Position-expanded conv weight: (16, 128). For output position p=(oh,ow),
    # column block p*32:(p+1)*32, row r = (oh+kh)*4 + (ow+kw) gets W[:, kh, kw].
    blocks = []
    for oh in range(2):
        for ow_ in range(2):
            rows_idx = jnp.array([(oh + kh) * 4 + (ow_ + kw)
                                  for kh in range(3) for kw in range(3)])
            blocks.append(
                jnp.zeros((16, 32), jnp.float32).at[rows_idx].set(conv_w))
    w_exp = jnp.concatenate(blocks, axis=1)                          # (16, 128)
    conv_b_tiled = jnp.tile(params["conv_b"], (1, 4))                # (1, 128)

    slab = jnp.zeros((rows, 128), jnp.float32)
    slab = slab.at[0:16, :].set(w_exp)
    slab = slab.at[16:17, :].set(conv_b_tiled)
    slab = slab.at[24:56, 0:64].set(params["dw_conv"])               # (32, 64)
    slab = slab.at[152:152 + A, 0:64].set(params["dw_afs"])          # (A, 64)
    slab = slab.at[152 + A_pad:153 + A_pad, 0:64].set(params["db"])  # (1, 64)
    slab = slab.at[160 + A_pad:161 + A_pad, 0:64].set(params["ow"].T)  # (1, 64)
    slab = slab.at[168 + A_pad:169 + A_pad, 0:1].set(params["ob"])   # (1, 1)
    return slab


# ----------------------------- Forward wrapper --------------------------------
@jax.jit
def custom_model_forward(x, afs_output, slab):
    """x: (B,1,4,4) f32, afs_output: (B,A) f32, slab: packed params -> (B,1)."""
    B = x.shape[0]
    A = afs_output.shape[1]
    A_pad = slab.shape[0] - 176
    assert B % 8 == 0, "batch must be a multiple of 8 (sublane group)"
    assert x.shape[1:] == (1, 4, 4), (
        "CustomModel semantics require (B,1,4,4) input (conv 2x2 -> pool 1x1)")

    # One activation slab: rows 0:B = x flattened, rows B:2B = afs (zero pad).
    L = max(16, A_pad)
    act = jnp.zeros((2 * B, L), jnp.float32)
    act = act.at[0:B, 0:16].set(x.reshape(B, 16))
    act = act.at[B:2 * B, 0:A].set(afs_output)

    kernel = make_model_kernel(B, A_pad)
    # Grid-less single-shot kernel: 2 input DMAs + 1 output DMA, all in VMEM.
    # TODO(synk): if B ever grows large, tile over batch with a 'parallel'
    # grid axis and bf16 matmul inputs.
    out = pl.pallas_call(
        kernel,
        out_shape=jax.ShapeDtypeStruct((B, 1), jnp.float32),
        in_specs=[
            pl.BlockSpec(memory_space=pltpu.MemorySpace.VMEM),
            pl.BlockSpec(memory_space=pltpu.MemorySpace.VMEM),
        ],
        out_specs=pl.BlockSpec(memory_space=pltpu.MemorySpace.VMEM),
    )(act, slab)
    return out


# ----------------------------- Params / reference -----------------------------
def init_params(key, afs_output_size):
    """Deterministic synthetic parameters (shapes from the nn.Module)."""
    ks = jax.random.split(key, 8)
    # Conv2d(1, 32, 3x3): weight (32, 1, 3, 3) -> stored as (9, 32)
    conv_w_t = jax.random.normal(ks[0], (32, 1, 3, 3), jnp.float32) * 0.1
    conv_w = conv_w_t.reshape(32, 9).T               # (9, 32), row = kh*3+kw
    conv_b = jax.random.normal(ks[1], (1, 32), jnp.float32) * 0.1
    # Linear(32 + A, 64): weight (64, 32+A) -> split & transposed
    dense_w = jax.random.normal(ks[2], (64, 32 + afs_output_size),
                                jnp.float32) * 0.1
    dw_conv = dense_w[:, :32].T                      # (32, 64)
    dw_afs = dense_w[:, 32:].T                       # (A, 64)
    db = jax.random.normal(ks[3], (1, 64), jnp.float32) * 0.1
    # Linear(64, 1): weight (1, 64) -> transposed (64, 1)
    out_w = jax.random.normal(ks[4], (1, 64), jnp.float32) * 0.1
    ow = out_w.T                                     # (64, 1)
    ob = jax.random.normal(ks[5], (1, 1), jnp.float32) * 0.1
    return {"conv_w": conv_w, "conv_b": conv_b, "dw_conv": dw_conv,
            "dw_afs": dw_afs, "db": db, "ow": ow, "ob": ob}


def reference_forward(x, afs_output, params):
    """Pure-JAX reference replicating the PyTorch forward."""
    conv_w = params["conv_w"].T.reshape(32, 1, 3, 3)  # back to (O, I, kh, kw)
    y = jax.lax.conv_general_dilated(
        x, conv_w, window_strides=(1, 1), padding="VALID",
        dimension_numbers=("NCHW", "OIHW", "NCHW"))
    y = y + params["conv_b"].reshape(1, 32, 1, 1)
    y = jax.lax.reduce_window(y, -jnp.inf, jax.lax.max,
                              (1, 1, 2, 2), (1, 1, 2, 2), "VALID")
    y = y.reshape(y.shape[0], -1)                     # (B, 32)
    cat = jnp.concatenate([y, afs_output], axis=1)    # (B, 32 + A)
    dense_w = jnp.concatenate([params["dw_conv"], params["dw_afs"]], axis=0)
    h = cat @ dense_w + params["db"]
    logits = h @ params["ow"] + params["ob"]
    return jax.nn.sigmoid(logits)


if __name__ == "__main__":
    B = 8
    AFS_SIZE = 16

    key = jax.random.PRNGKey(0)
    k_x, k_afs, k_p = jax.random.split(key, 3)

    # x must be (B, 1, 4, 4) so that conv(3x3) -> 2x2, pool(2x2) -> 1x1,
    # flatten -> 32 features, matching Linear(32 + afs_output_size, 64).
    x = jax.random.normal(k_x, (B, 1, 4, 4), jnp.float32)
    afs_output = jax.random.normal(k_afs, (B, AFS_SIZE), jnp.float32)
    params = init_params(k_p, AFS_SIZE)

    slab = pack_params(params, AFS_SIZE)   # packed once, off the forward path

    out = custom_model_forward(x, afs_output, slab)
    out = jax.block_until_ready(out)

    ref = jax.block_until_ready(reference_forward(x, afs_output, params))
    assert out.shape == (B, 1)
    assert jnp.allclose(out, ref, atol=1e-5, rtol=1e-5), (out, ref)

    print("KERNEL_OK")
</pallas_src>

<mosaic_0001>
module attributes {stable_mosaic.version = 11 : i64} {
  func.func @kernel(%arg0: memref<16x16xf32, #tpu.memory_space<vmem>>, %arg1: memref<192x128xf32, #tpu.memory_space<vmem>>, %arg2: memref<8x1xf32, #tpu.memory_space<vmem>>) attributes {dimension_semantics = [], scalar_prefetch = 0 : i64, scratch_operands = 0 : i64, tpu.core_type = #tpu.core_type<tc>} {
    %c0 = arith.constant 0 : index
    %c0_0 = arith.constant 0 : index
    %0 = vector.load %arg1[%c0, %c0_0] : memref<192x128xf32, #tpu.memory_space<vmem>>, vector<16x128xf32>
    %c16 = arith.constant 16 : index
    %c0_1 = arith.constant 0 : index
    %1 = vector.load %arg1[%c16, %c0_1] : memref<192x128xf32, #tpu.memory_space<vmem>>, vector<1x128xf32>
    %c24 = arith.constant 24 : index
    %c0_2 = arith.constant 0 : index
    %2 = vector.load %arg1[%c24, %c0_2] : memref<192x128xf32, #tpu.memory_space<vmem>>, vector<128x64xf32>
    %c152 = arith.constant 152 : index
    %c0_3 = arith.constant 0 : index
    %3 = vector.load %arg1[%c152, %c0_3] : memref<192x128xf32, #tpu.memory_space<vmem>>, vector<16x64xf32>
    %c168 = arith.constant 168 : index
    %c0_4 = arith.constant 0 : index
    %4 = vector.load %arg1[%c168, %c0_4] : memref<192x128xf32, #tpu.memory_space<vmem>>, vector<1x64xf32>
    %c176 = arith.constant 176 : index
    %c0_5 = arith.constant 0 : index
    %5 = vector.load %arg1[%c176, %c0_5] : memref<192x128xf32, #tpu.memory_space<vmem>>, vector<1x64xf32>
    %c184 = arith.constant 184 : index
    %c0_6 = arith.constant 0 : index
    %6 = vector.load %arg1[%c184, %c0_6] : memref<192x128xf32, #tpu.memory_space<vmem>>, vector<1x1xf32>
    %c0_7 = arith.constant 0 : index
    %c0_8 = arith.constant 0 : index
    %7 = vector.load %arg0[%c0_7, %c0_8] : memref<16x16xf32, #tpu.memory_space<vmem>>, vector<8x16xf32>
    %c8 = arith.constant 8 : index
    %c0_9 = arith.constant 0 : index
    %8 = vector.load %arg0[%c8, %c0_9] : memref<16x16xf32, #tpu.memory_space<vmem>>, vector<8x16xf32>
    %cst = arith.constant dense<0.000000e+00> : vector<8x128xf32>
    %9 = tpu.matmul %7, %0, %cst {dimension_numbers = #tpu.dot_dimension_numbers<[1], [0], [0], [1], [0, 0, 1, 1], [], []>} : vector<8x16xf32>, vector<16x128xf32>, vector<8x128xf32> -> vector<8x128xf32>
    %10 = vector.broadcast %1 : vector<1x128xf32> to vector<8x128xf32>
    %11 = arith.addf %9, %10 : vector<8x128xf32>
    %c64_i32 = arith.constant 64 : i32
    %12 = tpu.dynamic_rotate %11 by %c64_i32 dim 1 : vector<8x128xf32>, i32 -> vector<8x128xf32>
    %13 = arith.maximumf %11, %12 : vector<8x128xf32>
    %c32_i32 = arith.constant 32 : i32
    %14 = tpu.dynamic_rotate %13 by %c32_i32 dim 1 : vector<8x128xf32>, i32 -> vector<8x128xf32>
    %15 = arith.maximumf %13, %14 : vector<8x128xf32>
    %cst_10 = arith.constant dense<0.000000e+00> : vector<8x64xf32>
    %16 = tpu.matmul %15, %2, %cst_10 {dimension_numbers = #tpu.dot_dimension_numbers<[1], [0], [0], [1], [0, 0, 1, 1], [], []>} : vector<8x128xf32>, vector<128x64xf32>, vector<8x64xf32> -> vector<8x64xf32>
    %cst_11 = arith.constant dense<0.000000e+00> : vector<8x64xf32>
    %17 = tpu.matmul %8, %3, %cst_11 {dimension_numbers = #tpu.dot_dimension_numbers<[1], [0], [0], [1], [0, 0, 1, 1], [], []>} : vector<8x16xf32>, vector<16x64xf32>, vector<8x64xf32> -> vector<8x64xf32>
    %18 = arith.addf %16, %17 : vector<8x64xf32>
    %19 = vector.broadcast %4 : vector<1x64xf32> to vector<8x64xf32>
    %20 = arith.addf %18, %19 : vector<8x64xf32>
    %21 = vector.broadcast %5 : vector<1x64xf32> to vector<8x64xf32>
    %22 = arith.mulf %20, %21 : vector<8x64xf32>
    %cst_12 = arith.constant dense<0.000000e+00> : vector<8xf32>
    %23 = vector.multi_reduction <add>, %22, %cst_12 [1] : vector<8x64xf32> to vector<8xf32>
    %24 = vector.shape_cast %23 : vector<8xf32> to vector<8x1xf32>
    %25 = vector.broadcast %6 : vector<1x1xf32> to vector<8x1xf32>
    %26 = arith.addf %24, %25 : vector<8x1xf32>
    %27 = arith.negf %26 : vector<8x1xf32>
    %28 = math.exp %27 : vector<8x1xf32>
    %cst_13 = arith.constant 1.000000e+00 : f32
    %29 = vector.broadcast %cst_13 : f32 to vector<8x1xf32>
    %30 = arith.addf %29, %28 : vector<8x1xf32>
    %31 = arith.divf %29, %30 : vector<8x1xf32>
    %c0_14 = arith.constant 0 : index
    %c0_15 = arith.constant 0 : index
    %32 = vector.load %arg2[%c0_14, %c0_15] : memref<8x1xf32, #tpu.memory_space<vmem>>, vector<8x1xf32>
    tpu.vector_store %arg2[%c0_14, %c0_15], %31 {strides = array<i32>} : memref<8x1xf32, #tpu.memory_space<vmem>>, vector<8x1xf32>,
    return
  }
}

</mosaic_0001>

<bundles_post_ra>
// kernel: custom_model_forward.1
= control target key start
LH: loop header
LB: loop body
LE: loop exit
PB: predicated region body
PF: predicated region fallthrough
CT: control target
= control target key end

     0   :  { %7 = vsyncpa [#allocation3], 0  ;;  %s422_s9 = smov [#allocation2]   ;;  %s481_s0 = inlined_call_operand.vmem [shape: f32[16,16], index: 0, kind: input, shape index: {}]   ;;  %s482_s1 = inlined_call_operand.hbm [shape: f32[192,128], index: 1, kind: input, shape index: {}]   ;;  %s483_s2 = inlined_call_operand.vmem [shape: f32[8,1], index: 2, kind: output, shape index: {}]  }
   0x1   :  { %s15_s10 = sshll.u32 %s422_s9, 4  ;;  %s16_s10 = int_to_ptr.vmem [resolvable:$true] %s15_s10 }
   0x2   :  { %s408_s11 = scalar_lea.vmem %s16_s10, 3072  ;;  %p413_p1 = scmp.lt.s32.totalorder %s16_s10, %s16_s10 }
   0x3   :  { %p409_p0 = scmp.ne.s32.totalorder %s16_s10, %s408_s11  ;;  %p414_p2 = scmp.lt.s32.totalorder %s408_s11, %s408_s11 }
   0x5   :  { %p415_p3 = por %p414_p2, %p413_p1 }
   0x7   :  { %p416_p4 = pnand %p415_p3, %p409_p0 }
   0x9   :  { %419 = shalt.err (!%p416_p4)
}
   0xa   :  { %s423_s12 = smov 128   ;;  %s424_s13 = smov 8  }
   0xb   :  { %21 = dma.hbm_to_vmem [thread:$0]  %s482_s1, 3072, %s16_s10, [#allocation3], %s423_s12, %s423_s12, %s424_s13  }
   0xc   :  { %420 = dma.done.wait [#allocation3], 3072  }
   0xd   :  { %421 = vsyncadd [#allocation3], 4294964224  ;;  %v425_v0 = vmov 0.0   ;;  %vm426_vm0 = vmmov 0   ;;  %v26_v1 = vld [vmem:[#allocation2 + $0x8] sm:$0xff]  ;;  %v25_v2 = vld [vmem:[#allocation2] sm:$0xff] }
   0xe   :  { %340 = vmatprep.subr.mxu1 %v425_v0  ;;  %344 = vmatprep.mubr.msk.f32.mxu1 %vm426_vm0, %v425_v0  ;;  %v49_v3 = vld [vmem:[%s481_s0] sm:$0xff]  ;;  %vm55_vm1 = vcmask 130048   ;;  %v43_v4 = vld [vmem:[#allocation2 + $0x90] sm:$0xff]  ;;  %v42_v5 = vld [vmem:[#allocation2 + $0x88] sm:$0xff]  ;;  %s427_s1 = smov 64   ;;  %s428_s20 = smov 32  }
   0xf   :  { %354 = vmatprep.subr.mxu0 %v425_v0  ;;  %386 = vmatprep.mubr.msk.f32.mxu0 %vm426_vm0, %v425_v0  ;;  %v41_v6 = vld [vmem:[#allocation2 + $0x80] sm:$0xff]  ;;  %v40_v7 = vld [vmem:[#allocation2 + $0x78] sm:$0xff]  ;;  %v310_v10 = vld [vmem:[#allocation2 + $0x10] ss:$0 sm:$0xff]  ;;  %vm288_vm2 = vcmask 523264   ;;  %vm303_vm3 = vcmask 7168  }
  0x10   :  { %341 = vmatpush3.msra.mxu1 %v26_v1  ;;  %355 = vmatpush3.msra.mxu0 %v43_v4  ;;  %v45_v8 = vld [vmem:[#allocation2 + $0xa0] sm:$0xff]  ;;  %v44_v9 = vld [vmem:[#allocation2 + $0x98] sm:$0xff]  ;;  %v39_v11 = vld [vmem:[#allocation2 + $0x70] sm:$0xff] }
  0x11   :  { %342 = vmatprep.subr.mxu1 %v425_v0  ;;  %356 = vmatprep.subr.mxu0 %v425_v0  ;;  %v38_v13 = vld [vmem:[#allocation2 + $0x68] sm:$0xff]  ;;  %v37_v16 = vld [vmem:[#allocation2 + $0x60] sm:$0xff]  ;;  %v36_v17 = vld [vmem:[#allocation2 + $0x58] sm:$0xff] }
  0x12   :  { %343 = vmatpush3.msra.mxu1 %v25_v2  ;;  %357 = vmatpush3.msra.mxu0 %v42_v5  ;;  %v35_v18 = vld [vmem:[#allocation2 + $0x50] sm:$0xff]  ;;  %v34_v19 = vld [vmem:[#allocation2 + $0x48] sm:$0xff]  ;;  %v33_v20 = vld [vmem:[#allocation2 + $0x40] sm:$0xff] }
  0x13   :  { %345 = vmatmul.mubr.msk.f32.vlgmr.msra.gmra.mxu1 %vm55_vm1, %v49_v3  ;;  %347 = vmatprep.subr.mxu1 %v425_v0  ;;  %v32_v21 = vld [vmem:[#allocation2 + $0x38] sm:$0xff]  ;;  %v31_v22 = vld [vmem:[#allocation2 + $0x30] sm:$0xff]  ;;  %v30_v23 = vld [vmem:[#allocation2 + $0x28] sm:$0xff] }
  0x14   :  { %351 = vmatprep.mubr.msk.f32.mxu1 %vm426_vm0, %v425_v0  ;;  %358 = vmatprep.subr.mxu0 %v425_v0  ;;  %v29_v24 = vld [vmem:[#allocation2 + $0x20] sm:$0xff]  ;;  %v50_v25 = vld [vmem:[%s481_s0 + $0x8] sm:$0xff]  ;;  %v28_v26 = vld [vmem:[#allocation2 + $0x18] sm:$0xff] }
  0x15   :  { %359 = vmatpush3.msra.mxu0 %v41_v6  ;;  %348 = vmatpush3.msra.mxu1 %v45_v8  ;;  %v313_v33 = vld [vmem:[#allocation2 + $0xa8] ss:$0 sm:$0xff]  ;;  %v314_v37 = vld [vmem:[#allocation2 + $0xb0] ss:$0 sm:$0xff]  ;;  %v315_v41 = vld [vmem:[#allocation2 + $0xb8] ss:$0 sm:$0xff] }
  0x16   :  { %360 = vmatprep.subr.mxu0 %v425_v0  ;;  %349 = vmatprep.subr.mxu1 %v425_v0 }
  0x17   :  { %361 = vmatpush3.msra.mxu0 %v40_v7  ;;  %350 = vmatpush3.msra.mxu1 %v44_v9 }
  0x18   :  { %362 = vmatprep.subr.mxu0 %v425_v0  ;;  %352 = vmatmul.mubr.msk.f32.vlgmr.msra.gmra.mxu1 %vm55_vm1, %v50_v25 }
  0x19   :  { %363 = vmatpush3.msra.mxu0 %v39_v11 }
  0x1a   :  { %364 = vmatprep.subr.mxu0 %v425_v0 }
  0x1b   :  { %365 = vmatpush3.msra.mxu0 %v38_v13 }
  0x1c   :  { %366 = vmatprep.subr.mxu0 %v425_v0 }
  0x1d   :  { %367 = vmatpush3.msra.mxu0 %v37_v16 }
  0x1e   :  { %368 = vmatprep.subr.mxu0 %v425_v0 }
  0x1f   :  { %369 = vmatpush3.msra.mxu0 %v36_v17 }
  0x20   :  { %370 = vmatprep.subr.mxu0 %v425_v0 }
  0x21   :  { %371 = vmatpush3.msra.mxu0 %v35_v18 }
  0x22   :  { %372 = vmatprep.subr.mxu0 %v425_v0 }
  0x23   :  { %373 = vmatpush3.msra.mxu0 %v34_v19 }
  0x24   :  { %374 = vmatprep.subr.mxu0 %v425_v0 }
  0x25   :  { %375 = vmatpush3.msra.mxu0 %v33_v20 }
  0x26   :  { %376 = vmatprep.subr.mxu0 %v425_v0 }
  0x27   :  { %377 = vmatpush3.msra.mxu0 %v32_v21 }
  0x28   :  { %378 = vmatprep.subr.mxu0 %v425_v0 }
  0x29   :  { %379 = vmatpush3.msra.mxu0 %v31_v22 }
  0x2a   :  { %380 = vmatprep.subr.mxu0 %v425_v0 }
  0x2b   :  { %381 = vmatpush3.msra.mxu0 %v30_v23 }
  0x2c   :  { %382 = vmatprep.subr.mxu0 %v425_v0 }
  0x2d   :  { %383 = vmatpush3.msra.mxu0 %v29_v24 }
  0x2e   :  { %384 = vmatprep.subr.mxu0 %v425_v0 }
  0x2f   :  { %385 = vmatpush3.msra.mxu0 %v28_v26 }
  0xd3   :  { %v125_v12 = vpop.f32.mrf.mxu1 }
  0xd4   :  { %v126_v14 = vadd.f32 %v310_v10, %v125_v12 }
  0xd5   :  { %v346_v15 = vpop.f32.mrf.mxu1 }
  0xd6   :  { %129 = vrot.lane.b32.xlu0 %v126_v14, %s427_s1 }
  0xd8   :  { %v204_v31 = vpop.f32.mrf.mxu1 }
  0xda   :  { %v353_v32 = vpop.f32.mrf.mxu1 }
 0x148   :  { %v130_v27 = vpop.permute.xlu0 %129 }
 0x149   :  { %v131_v28 = vmax.f32 %v126_v14, %v130_v27 }
 0x14b   :  { %132 = vrot.lane.b32.xlu0 %v131_v28, %s428_s20 }
 0x1bd   :  { %v133_v29 = vpop.permute.xlu0 %132 }
 0x1be   :  { %v134_v30 = vmax.f32 %v131_v28, %v133_v29 }
 0x1c0   :  { %387 = vmatmul.mubr.f32.vlgmr.msra.gmra.mxu0 %v134_v30 }
 0x280   :  { %v274_v34 = vpop.f32.mrf.mxu0 }
 0x281   :  { %v275_v35 = vadd.f32 %v274_v34, %v204_v31 }
 0x282   :  { %v388_v36 = vpop.f32.mrf.mxu0 }
 0x283   :  { %v282_v38 = vadd.f32 %v313_v33, %v275_v35 }
 0x285   :  { %v287_v39 = vmul.f32 %v314_v37, %v282_v38 }
 0x287   :  { %v289_v40 = vsel %vm288_vm2, %v287_v39, 0.0 }
 0x288   :  { %290 = vadd.xlane.f32.xlu1 %v289_v40 }
 0x311   :  { %v291_v42 = vpop.xlane.xlu1 %290 }
 0x312   :  { %v296_v43 = vadd.f32 %v315_v41, %v291_v42 }
 0x314   :  { %v316_v44 = vmul.f32 -1.442695, %v296_v43 }
 0x316   :  { %396 = vpow2.f32 %v316_v44 }
 0x323   :  { %v397_v45 = vpop.eup %396 }
 0x324   :  { %v300_v46 = vadd.f32 1.0, %v397_v45 }
 0x326   :  { %398 = vrcp.f32 %v300_v46 }
 0x333   :  { %v399_v47 = vpop.eup %398 }
 0x334   :  { %304 = vst.msk [vmem:[%s483_s2] sm:$0xff] %vm303_vm3, %v399_v47 }
 0x335   :  { %309 = vsyncpa [#allocation3], 1 }

</bundles_post_ra>
